<compile_context>
chip_gen: v6e
topology: v6e:2x2x1
jax: 0.10.0
libtpu: 0.0.40
codegen_flags: <defaults>
</compile_context>

<pallas_src>
import math

import numpy as np
import jax
import jax.numpy as jnp
from jax import lax
from jax.experimental import pallas as pl
from jax.experimental.pallas import tpu as pltpu

# ---------------- problem sizes (small, consistent with the module) ----------
B = 2          # batch
S = 8          # sequence length
MODEL_DIM = 32
FF_DIM = 64
ATTEN_DIM = 16
HEAD_NUM = 2
HA = HEAD_NUM * ATTEN_DIM
LN_EPS = 1e-5


# ---------------- in-kernel helpers ------------------------------------------
def _gelu(x):
    # exact (erf) GELU, matching torch.nn.functional.gelu default
    return 0.5 * x * (1.0 + lax.erf(x * (1.0 / math.sqrt(2.0))))


def _layernorm(x, gamma, beta):
    # x: (N, D), gamma/beta: (1, D); biased variance, eps=1e-5 (PyTorch default)
    mean = jnp.mean(x, axis=-1, keepdims=True)
    xc = x - mean
    var = jnp.mean(xc * xc, axis=-1, keepdims=True)
    inv = lax.rsqrt(var + LN_EPS)
    return xc * inv * gamma + beta


# ---------------- the fused kernel --------------------------------------------
def transformer_block_kernel(
    q_ref, k_ref, v_ref,    # (B*S, D) each
    wqkv_ref,               # (3, H, D, A)  q/k/v projection weights, per head
    bqkv_ref,               # (3, H, 1, A)  q/k/v projection biases, per head
    woh_ref,                # (H, A, D)     output projection weight, per head
    vec_ref,                # (8, F)        packed 1-row vectors (see _pack_params)
    w1_ref,                 # (D, F)        conv1 (kernel_size=1) as matmul
    w2_ref,                 # (F, D)        conv2 (kernel_size=1) as matmul
    o_ref,                  # (B*S, D)
):
    q = q_ref[...]
    k = k_ref[...]
    v = v_ref[...]

    # Load the packed parameter slabs once; index them as values below.
    wqkv = wqkv_ref[...]
    bqkv = bqkv_ref[...]
    woh = woh_ref[...]
    vec = vec_ref[...]

    bo  = vec[0:1, :MODEL_DIM]
    g1  = vec[1:2, :MODEL_DIM]
    be1 = vec[2:3, :MODEL_DIM]
    bc1 = vec[3:4, :]                 # (1, F)
    bc2 = vec[4:5, :MODEL_DIM]
    g2  = vec[5:6, :MODEL_DIM]
    be2 = vec[6:7, :MODEL_DIM]

    scale = 1.0 / math.sqrt(ATTEN_DIM)

    # ---- multi-head attention (heads & batches statically unrolled) ----
    attn = None
    for h in range(HEAD_NUM):
        qh = jnp.dot(q, wqkv[0, h], preferred_element_type=jnp.float32) + bqkv[0, h]
        kh = jnp.dot(k, wqkv[1, h], preferred_element_type=jnp.float32) + bqkv[1, h]
        vh = jnp.dot(v, wqkv[2, h], preferred_element_type=jnp.float32) + bqkv[2, h]

        ctx_rows = []
        for b in range(B):            # sublane-aligned row slices (multiples of 8)
            lo = b * S
            qb = qh[lo:lo + S]        # (S, A)
            kb = kh[lo:lo + S]
            vb = vh[lo:lo + S]
            # Q·Kᵀ without an explicit transpose: contract head-dim of both.
            s = lax.dot_general(
                qb, kb, dimension_numbers=(((1,), (1,)), ((), ())),
                preferred_element_type=jnp.float32) * scale        # (S, S)
            s = s - jnp.max(s, axis=-1, keepdims=True)
            p = jnp.exp(s)
            p = p * pl.reciprocal(jnp.sum(p, axis=-1, keepdims=True), approx=True)
            ctx_rows.append(jnp.dot(p, vb, preferred_element_type=jnp.float32))  # (S, A)

        ctx = jnp.concatenate(ctx_rows, axis=0)                    # (B*S, A), sublane concat
        contrib = jnp.dot(ctx, woh[h], preferred_element_type=jnp.float32)   # (B*S, D)
        attn = contrib if attn is None else attn + contrib
    attn = attn + bo

    # ---- residual (v) + norm1 ----
    x = _layernorm(attn + v, g1, be1)

    # ---- position-wise FFN (Conv1d kernel_size=1 == per-token linear) ----
    h1 = _gelu(jnp.dot(x, w1_ref[...], preferred_element_type=jnp.float32) + bc1)
    h2 = _gelu(jnp.dot(h1, w2_ref[...], preferred_element_type=jnp.float32) + bc2)

    # ---- residual (v) + norm2 ----
    o_ref[...] = _layernorm(h2 + v, g2, be2)


# ---------------- parameter packing (host side, layout plumbing only) ---------
def _pack_params(params):
    (wq, wk, wv, bq, bk, bv, wo, bo,
     g1, be1, w1, bc1, w2, bc2, g2, be2) = params

    def per_head_w(w):   # (D, H*A) -> (H, D, A)
        return w.reshape(MODEL_DIM, HEAD_NUM, ATTEN_DIM).transpose(1, 0, 2)

    def per_head_b(b):   # (1, H*A) -> (H, 1, A)
        return b.reshape(HEAD_NUM, 1, ATTEN_DIM)

    wqkv = jnp.stack([per_head_w(wq), per_head_w(wk), per_head_w(wv)], axis=0)  # (3,H,D,A)
    bqkv = jnp.stack([per_head_b(bq), per_head_b(bk), per_head_b(bv)], axis=0)  # (3,H,1,A)
    woh = wo.reshape(HEAD_NUM, ATTEN_DIM, MODEL_DIM)                            # (H,A,D)

    def pad_row(r):      # (1, n) -> (1, FF_DIM)
        return jnp.pad(r, ((0, 0), (0, FF_DIM - r.shape[1])))

    # rows: bo, g1, be1, bc1, bc2, g2, be2, <pad>
    vecs = jnp.concatenate(
        [pad_row(bo), pad_row(g1), pad_row(be1), bc1,
         pad_row(bc2), pad_row(g2), pad_row(be2),
         jnp.zeros((1, FF_DIM), jnp.float32)], axis=0)                          # (8, F)

    return wqkv, bqkv, woh, vecs, w1, w2


# ---------------- wrapper ------------------------------------------------------
@jax.jit
def transformer_block(q, k, v, params):
    wqkv, bqkv, woh, vecs, w1, w2 = _pack_params(params)
    q2 = q.reshape(B * S, MODEL_DIM)
    k2 = k.reshape(B * S, MODEL_DIM)
    v2 = v.reshape(B * S, MODEL_DIM)

    vmem = pltpu.MemorySpace.VMEM
    out = pl.pallas_call(
        transformer_block_kernel,
        out_shape=jax.ShapeDtypeStruct((B * S, MODEL_DIM), jnp.float32),
        in_specs=[pl.BlockSpec(memory_space=vmem) for _ in range(9)],
        out_specs=pl.BlockSpec(memory_space=vmem),
    )(q2, k2, v2, wqkv, bqkv, woh, vecs, w1, w2)
    return out.reshape(B, S, MODEL_DIM)


# ---------------- deterministic parameter init --------------------------------
def init_params(key):
    ks = jax.random.split(key, 16)

    def lin_uniform(k, shape, fan_in):
        bound = 1.0 / math.sqrt(fan_in)
        return jax.random.uniform(k, shape, jnp.float32, -bound, bound)

    # Attention Linear layers (PyTorch nn.Linear default init), stored transposed.
    wq = lin_uniform(ks[0], (MODEL_DIM, HA), MODEL_DIM)
    wk = lin_uniform(ks[1], (MODEL_DIM, HA), MODEL_DIM)
    wv = lin_uniform(ks[2], (MODEL_DIM, HA), MODEL_DIM)
    bq = lin_uniform(ks[3], (1, HA), MODEL_DIM)
    bk = lin_uniform(ks[4], (1, HA), MODEL_DIM)
    bv = lin_uniform(ks[5], (1, HA), MODEL_DIM)
    wo = lin_uniform(ks[6], (HA, MODEL_DIM), HA)
    bo = lin_uniform(ks[7], (1, MODEL_DIM), HA)

    # LayerNorms
    g1 = jnp.ones((1, MODEL_DIM), jnp.float32)
    be1 = jnp.zeros((1, MODEL_DIM), jnp.float32)
    g2 = jnp.ones((1, MODEL_DIM), jnp.float32)
    be2 = jnp.zeros((1, MODEL_DIM), jnp.float32)

    # Conv1d(kernel_size=1) weights, kaiming_normal fan_in / leaky_relu gain.
    gain = math.sqrt(2.0 / (1.0 + 0.01 ** 2))
    std1 = gain / math.sqrt(MODEL_DIM)          # conv1 fan_in = model_dim * 1
    std2 = gain / math.sqrt(FF_DIM)             # conv2 fan_in = ff_dim * 1
    # stored pre-transposed: x[N,D] @ w1[D,F] ; h[N,F] @ w2[F,D]
    w1 = std1 * jax.random.normal(ks[8], (MODEL_DIM, FF_DIM), jnp.float32)
    w2 = std2 * jax.random.normal(ks[9], (FF_DIM, MODEL_DIM), jnp.float32)
    bc1 = lin_uniform(ks[10], (1, FF_DIM), MODEL_DIM)   # PyTorch conv bias default
    bc2 = lin_uniform(ks[11], (1, MODEL_DIM), FF_DIM)

    return (wq, wk, wv, bq, bk, bv, wo, bo,
            g1, be1, w1, bc1, w2, bc2, g2, be2)


# ---------------- pure-JAX reference (for correctness check) ------------------
def reference(q, k, v, params):
    (wq, wk, wv, bq, bk, bv, wo, bo,
     g1, be1, w1, bc1, w2, bc2, g2, be2) = params

    def ln(x, g, b):
        m = jnp.mean(x, -1, keepdims=True)
        var = jnp.mean((x - m) ** 2, -1, keepdims=True)
        return (x - m) / jnp.sqrt(var + LN_EPS) * g + b

    def gelu(x):
        return 0.5 * x * (1.0 + lax.erf(x / math.sqrt(2.0)))

    qp = q @ wq + bq
    kp = k @ wk + bk
    vp = v @ wv + bv
    qh = qp.reshape(B, S, HEAD_NUM, ATTEN_DIM).transpose(0, 2, 1, 3)
    kh = kp.reshape(B, S, HEAD_NUM, ATTEN_DIM).transpose(0, 2, 1, 3)
    vh = vp.reshape(B, S, HEAD_NUM, ATTEN_DIM).transpose(0, 2, 1, 3)
    s = jnp.einsum("bhqd,bhkd->bhqk", qh, kh) / math.sqrt(ATTEN_DIM)
    p = jax.nn.softmax(s, axis=-1)
    ctx = jnp.einsum("bhqk,bhkd->bhqd", p, vh).transpose(0, 2, 1, 3).reshape(B, S, HA)
    attn = ctx @ wo + bo

    x = ln(attn + v, g1, be1)
    h1 = gelu(x @ w1 + bc1)
    h2 = gelu(h1 @ w2 + bc2)
    return ln(h2 + v, g2, be2)


# ---------------- main ---------------------------------------------------------
if __name__ == "__main__":
    key = jax.random.PRNGKey(0)
    kq, kk, kv, kp = jax.random.split(key, 4)
    q = jax.random.normal(kq, (B, S, MODEL_DIM), jnp.float32)
    k = jax.random.normal(kk, (B, S, MODEL_DIM), jnp.float32)
    v = jax.random.normal(kv, (B, S, MODEL_DIM), jnp.float32)
    params = init_params(kp)

    out = jax.block_until_ready(transformer_block(q, k, v, params))

    ref = reference(q, k, v, params)
    # approx=True softmax reciprocal perturbs results at the ~1e-4 level;
    # use a looser tolerance that still catches any structural bug.
    np.testing.assert_allclose(np.asarray(out), np.asarray(ref),
                               rtol=5e-3, atol=5e-3)
    print("KERNEL_OK")
</pallas_src>

<mosaic_0001>
module attributes {stable_mosaic.version = 11 : i64} {
  func.func @transformer_block_kernel(%arg0: memref<16x32xf32, #tpu.memory_space<vmem>>, %arg1: memref<16x32xf32, #tpu.memory_space<vmem>>, %arg2: memref<16x32xf32, #tpu.memory_space<vmem>>, %arg3: memref<3x2x32x16xf32, #tpu.memory_space<vmem>>, %arg4: memref<3x2x1x16xf32, #tpu.memory_space<vmem>>, %arg5: memref<2x16x32xf32, #tpu.memory_space<vmem>>, %arg6: memref<8x64xf32, #tpu.memory_space<vmem>>, %arg7: memref<32x64xf32, #tpu.memory_space<vmem>>, %arg8: memref<64x32xf32, #tpu.memory_space<vmem>>, %arg9: memref<16x32xf32, #tpu.memory_space<vmem>>) attributes {dimension_semantics = [], scalar_prefetch = 0 : i64, scratch_operands = 0 : i64, tpu.core_type = #tpu.core_type<tc>} {
    %c0 = arith.constant 0 : index
    %c0_0 = arith.constant 0 : index
    %0 = vector.load %arg0[%c0, %c0_0] : memref<16x32xf32, #tpu.memory_space<vmem>>, vector<16x32xf32>
    %c0_1 = arith.constant 0 : index
    %c0_2 = arith.constant 0 : index
    %1 = vector.load %arg1[%c0_1, %c0_2] : memref<16x32xf32, #tpu.memory_space<vmem>>, vector<16x32xf32>
    %c0_3 = arith.constant 0 : index
    %c0_4 = arith.constant 0 : index
    %2 = vector.load %arg2[%c0_3, %c0_4] : memref<16x32xf32, #tpu.memory_space<vmem>>, vector<16x32xf32>
    %c0_5 = arith.constant 0 : index
    %c0_6 = arith.constant 0 : index
    %c0_7 = arith.constant 0 : index
    %c0_8 = arith.constant 0 : index
    %3 = vector.load %arg3[%c0_5, %c0_6, %c0_7, %c0_8] : memref<3x2x32x16xf32, #tpu.memory_space<vmem>>, vector<3x2x32x16xf32>
    %c0_9 = arith.constant 0 : index
    %c0_10 = arith.constant 0 : index
    %c0_11 = arith.constant 0 : index
    %c0_12 = arith.constant 0 : index
    %4 = vector.load %arg4[%c0_9, %c0_10, %c0_11, %c0_12] : memref<3x2x1x16xf32, #tpu.memory_space<vmem>>, vector<3x2x1x16xf32>
    %c0_13 = arith.constant 0 : index
    %c0_14 = arith.constant 0 : index
    %c0_15 = arith.constant 0 : index
    %5 = vector.load %arg5[%c0_13, %c0_14, %c0_15] : memref<2x16x32xf32, #tpu.memory_space<vmem>>, vector<2x16x32xf32>
    %c0_16 = arith.constant 0 : index
    %c0_17 = arith.constant 0 : index
    %6 = vector.load %arg6[%c0_16, %c0_17] : memref<8x64xf32, #tpu.memory_space<vmem>>, vector<8x64xf32>
    %7 = vector.extract_strided_slice %6 {offsets = [0, 0], sizes = [1, 32], strides = [1, 1]} : vector<8x64xf32> to vector<1x32xf32>
    %8 = vector.extract_strided_slice %6 {offsets = [1, 0], sizes = [1, 32], strides = [1, 1]} : vector<8x64xf32> to vector<1x32xf32>
    %9 = vector.extract_strided_slice %6 {offsets = [2, 0], sizes = [1, 32], strides = [1, 1]} : vector<8x64xf32> to vector<1x32xf32>
    %10 = vector.extract_strided_slice %6 {offsets = [3, 0], sizes = [1, 64], strides = [1, 1]} : vector<8x64xf32> to vector<1x64xf32>
    %11 = vector.extract_strided_slice %6 {offsets = [4, 0], sizes = [1, 32], strides = [1, 1]} : vector<8x64xf32> to vector<1x32xf32>
    %12 = vector.extract_strided_slice %6 {offsets = [5, 0], sizes = [1, 32], strides = [1, 1]} : vector<8x64xf32> to vector<1x32xf32>
    %13 = vector.extract_strided_slice %6 {offsets = [6, 0], sizes = [1, 32], strides = [1, 1]} : vector<8x64xf32> to vector<1x32xf32>
    %14 = vector.extract_strided_slice %3 {offsets = [0, 0, 0, 0], sizes = [1, 1, 32, 16], strides = [1, 1, 1, 1]} : vector<3x2x32x16xf32> to vector<1x1x32x16xf32>
    %15 = vector.shape_cast %14 : vector<1x1x32x16xf32> to vector<32x16xf32>
    %cst = arith.constant dense<0.000000e+00> : vector<16x16xf32>
    %16 = tpu.matmul %0, %15, %cst {dimension_numbers = #tpu.dot_dimension_numbers<[1], [0], [0], [1], [0, 0, 1, 1], [], []>} : vector<16x32xf32>, vector<32x16xf32>, vector<16x16xf32> -> vector<16x16xf32>
    %17 = vector.extract_strided_slice %4 {offsets = [0, 0, 0, 0], sizes = [1, 1, 1, 16], strides = [1, 1, 1, 1]} : vector<3x2x1x16xf32> to vector<1x1x1x16xf32>
    %18 = vector.shape_cast %17 : vector<1x1x1x16xf32> to vector<1x16xf32>
    %19 = vector.broadcast %18 : vector<1x16xf32> to vector<16x16xf32>
    %20 = arith.addf %16, %19 : vector<16x16xf32>
    %21 = vector.extract_strided_slice %3 {offsets = [1, 0, 0, 0], sizes = [1, 1, 32, 16], strides = [1, 1, 1, 1]} : vector<3x2x32x16xf32> to vector<1x1x32x16xf32>
    %22 = vector.shape_cast %21 : vector<1x1x32x16xf32> to vector<32x16xf32>
    %cst_18 = arith.constant dense<0.000000e+00> : vector<16x16xf32>
    %23 = tpu.matmul %1, %22, %cst_18 {dimension_numbers = #tpu.dot_dimension_numbers<[1], [0], [0], [1], [0, 0, 1, 1], [], []>} : vector<16x32xf32>, vector<32x16xf32>, vector<16x16xf32> -> vector<16x16xf32>
    %24 = vector.extract_strided_slice %4 {offsets = [1, 0, 0, 0], sizes = [1, 1, 1, 16], strides = [1, 1, 1, 1]} : vector<3x2x1x16xf32> to vector<1x1x1x16xf32>
    %25 = vector.shape_cast %24 : vector<1x1x1x16xf32> to vector<1x16xf32>
    %26 = vector.broadcast %25 : vector<1x16xf32> to vector<16x16xf32>
    %27 = arith.addf %23, %26 : vector<16x16xf32>
    %28 = vector.extract_strided_slice %3 {offsets = [2, 0, 0, 0], sizes = [1, 1, 32, 16], strides = [1, 1, 1, 1]} : vector<3x2x32x16xf32> to vector<1x1x32x16xf32>
    %29 = vector.shape_cast %28 : vector<1x1x32x16xf32> to vector<32x16xf32>
    %cst_19 = arith.constant dense<0.000000e+00> : vector<16x16xf32>
    %30 = tpu.matmul %2, %29, %cst_19 {dimension_numbers = #tpu.dot_dimension_numbers<[1], [0], [0], [1], [0, 0, 1, 1], [], []>} : vector<16x32xf32>, vector<32x16xf32>, vector<16x16xf32> -> vector<16x16xf32>
    %31 = vector.extract_strided_slice %4 {offsets = [2, 0, 0, 0], sizes = [1, 1, 1, 16], strides = [1, 1, 1, 1]} : vector<3x2x1x16xf32> to vector<1x1x1x16xf32>
    %32 = vector.shape_cast %31 : vector<1x1x1x16xf32> to vector<1x16xf32>
    %33 = vector.broadcast %32 : vector<1x16xf32> to vector<16x16xf32>
    %34 = arith.addf %30, %33 : vector<16x16xf32>
    %35 = vector.extract_strided_slice %20 {offsets = [0, 0], sizes = [8, 16], strides = [1, 1]} : vector<16x16xf32> to vector<8x16xf32>
    %36 = vector.extract_strided_slice %27 {offsets = [0, 0], sizes = [8, 16], strides = [1, 1]} : vector<16x16xf32> to vector<8x16xf32>
    %37 = vector.extract_strided_slice %34 {offsets = [0, 0], sizes = [8, 16], strides = [1, 1]} : vector<16x16xf32> to vector<8x16xf32>
    %cst_20 = arith.constant dense<0.000000e+00> : vector<8x8xf32>
    %38 = tpu.matmul %35, %36, %cst_20 {dimension_numbers = #tpu.dot_dimension_numbers<[1], [1], [0], [0], [0, 0, 1, 0], [], []>} : vector<8x16xf32>, vector<8x16xf32>, vector<8x8xf32> -> vector<8x8xf32>
    %cst_21 = arith.constant 2.500000e-01 : f32
    %39 = vector.broadcast %cst_21 : f32 to vector<8x8xf32>
    %40 = arith.mulf %38, %39 : vector<8x8xf32>
    %cst_22 = arith.constant dense<0xFF800000> : vector<8xf32>
    %41 = vector.multi_reduction <maximumf>, %40, %cst_22 [1] : vector<8x8xf32> to vector<8xf32>
    %42 = vector.shape_cast %41 : vector<8xf32> to vector<8x1xf32>
    %43 = vector.broadcast %42 : vector<8x1xf32> to vector<8x8xf32>
    %44 = arith.subf %40, %43 : vector<8x8xf32>
    %45 = math.exp %44 : vector<8x8xf32>
    %cst_23 = arith.constant dense<0.000000e+00> : vector<8xf32>
    %46 = vector.multi_reduction <add>, %45, %cst_23 [1] : vector<8x8xf32> to vector<8xf32>
    %47 = vector.shape_cast %46 : vector<8xf32> to vector<8x1xf32>
    %48 = tpu.reciprocal %47 {approx = true} : vector<8x1xf32> -> vector<8x1xf32>
    %49 = vector.broadcast %48 : vector<8x1xf32> to vector<8x8xf32>
    %50 = arith.mulf %45, %49 : vector<8x8xf32>
    %cst_24 = arith.constant dense<0.000000e+00> : vector<8x16xf32>
    %51 = tpu.matmul %50, %37, %cst_24 {dimension_numbers = #tpu.dot_dimension_numbers<[1], [0], [0], [1], [0, 0, 1, 1], [], []>} : vector<8x8xf32>, vector<8x16xf32>, vector<8x16xf32> -> vector<8x16xf32>
    %52 = vector.extract_strided_slice %20 {offsets = [8, 0], sizes = [8, 16], strides = [1, 1]} : vector<16x16xf32> to vector<8x16xf32>
    %53 = vector.extract_strided_slice %27 {offsets = [8, 0], sizes = [8, 16], strides = [1, 1]} : vector<16x16xf32> to vector<8x16xf32>
    %54 = vector.extract_strided_slice %34 {offsets = [8, 0], sizes = [8, 16], strides = [1, 1]} : vector<16x16xf32> to vector<8x16xf32>
    %cst_25 = arith.constant dense<0.000000e+00> : vector<8x8xf32>
    %55 = tpu.matmul %52, %53, %cst_25 {dimension_numbers = #tpu.dot_dimension_numbers<[1], [1], [0], [0], [0, 0, 1, 0], [], []>} : vector<8x16xf32>, vector<8x16xf32>, vector<8x8xf32> -> vector<8x8xf32>
    %cst_26 = arith.constant 2.500000e-01 : f32
    %56 = vector.broadcast %cst_26 : f32 to vector<8x8xf32>
    %57 = arith.mulf %55, %56 : vector<8x8xf32>
    %cst_27 = arith.constant dense<0xFF800000> : vector<8xf32>
    %58 = vector.multi_reduction <maximumf>, %57, %cst_27 [1] : vector<8x8xf32> to vector<8xf32>
    %59 = vector.shape_cast %58 : vector<8xf32> to vector<8x1xf32>
    %60 = vector.broadcast %59 : vector<8x1xf32> to vector<8x8xf32>
    %61 = arith.subf %57, %60 : vector<8x8xf32>
    %62 = math.exp %61 : vector<8x8xf32>
    %cst_28 = arith.constant dense<0.000000e+00> : vector<8xf32>
    %63 = vector.multi_reduction <add>, %62, %cst_28 [1] : vector<8x8xf32> to vector<8xf32>
    %64 = vector.shape_cast %63 : vector<8xf32> to vector<8x1xf32>
    %65 = tpu.reciprocal %64 {approx = true} : vector<8x1xf32> -> vector<8x1xf32>
    %66 = vector.broadcast %65 : vector<8x1xf32> to vector<8x8xf32>
    %67 = arith.mulf %62, %66 : vector<8x8xf32>
    %cst_29 = arith.constant dense<0.000000e+00> : vector<8x16xf32>
    %68 = tpu.matmul %67, %54, %cst_29 {dimension_numbers = #tpu.dot_dimension_numbers<[1], [0], [0], [1], [0, 0, 1, 1], [], []>} : vector<8x8xf32>, vector<8x16xf32>, vector<8x16xf32> -> vector<8x16xf32>
    %69 = tpu.concatenate %51, %68 in 0 : vector<8x16xf32>, vector<8x16xf32> -> vector<16x16xf32>
    %70 = vector.extract_strided_slice %5 {offsets = [0, 0, 0], sizes = [1, 16, 32], strides = [1, 1, 1]} : vector<2x16x32xf32> to vector<1x16x32xf32>
    %71 = vector.shape_cast %70 : vector<1x16x32xf32> to vector<16x32xf32>
    %cst_30 = arith.constant dense<0.000000e+00> : vector<16x32xf32>
    %72 = tpu.matmul %69, %71, %cst_30 {dimension_numbers = #tpu.dot_dimension_numbers<[1], [0], [0], [1], [0, 0, 1, 1], [], []>} : vector<16x16xf32>, vector<16x32xf32>, vector<16x32xf32> -> vector<16x32xf32>
    %73 = vector.extract_strided_slice %3 {offsets = [0, 1, 0, 0], sizes = [1, 1, 32, 16], strides = [1, 1, 1, 1]} : vector<3x2x32x16xf32> to vector<1x1x32x16xf32>
    %74 = vector.shape_cast %73 : vector<1x1x32x16xf32> to vector<32x16xf32>
    %cst_31 = arith.constant dense<0.000000e+00> : vector<16x16xf32>
    %75 = tpu.matmul %0, %74, %cst_31 {dimension_numbers = #tpu.dot_dimension_numbers<[1], [0], [0], [1], [0, 0, 1, 1], [], []>} : vector<16x32xf32>, vector<32x16xf32>, vector<16x16xf32> -> vector<16x16xf32>
    %76 = vector.extract_strided_slice %4 {offsets = [0, 1, 0, 0], sizes = [1, 1, 1, 16], strides = [1, 1, 1, 1]} : vector<3x2x1x16xf32> to vector<1x1x1x16xf32>
    %77 = vector.shape_cast %76 : vector<1x1x1x16xf32> to vector<1x16xf32>
    %78 = vector.broadcast %77 : vector<1x16xf32> to vector<16x16xf32>
    %79 = arith.addf %75, %78 : vector<16x16xf32>
    %80 = vector.extract_strided_slice %3 {offsets = [1, 1, 0, 0], sizes = [1, 1, 32, 16], strides = [1, 1, 1, 1]} : vector<3x2x32x16xf32> to vector<1x1x32x16xf32>
    %81 = vector.shape_cast %80 : vector<1x1x32x16xf32> to vector<32x16xf32>
    %cst_32 = arith.constant dense<0.000000e+00> : vector<16x16xf32>
    %82 = tpu.matmul %1, %81, %cst_32 {dimension_numbers = #tpu.dot_dimension_numbers<[1], [0], [0], [1], [0, 0, 1, 1], [], []>} : vector<16x32xf32>, vector<32x16xf32>, vector<16x16xf32> -> vector<16x16xf32>
    %83 = vector.extract_strided_slice %4 {offsets = [1, 1, 0, 0], sizes = [1, 1, 1, 16], strides = [1, 1, 1, 1]} : vector<3x2x1x16xf32> to vector<1x1x1x16xf32>
    %84 = vector.shape_cast %83 : vector<1x1x1x16xf32> to vector<1x16xf32>
    %85 = vector.broadcast %84 : vector<1x16xf32> to vector<16x16xf32>
    %86 = arith.addf %82, %85 : vector<16x16xf32>
    %87 = vector.extract_strided_slice %3 {offsets = [2, 1, 0, 0], sizes = [1, 1, 32, 16], strides = [1, 1, 1, 1]} : vector<3x2x32x16xf32> to vector<1x1x32x16xf32>
    %88 = vector.shape_cast %87 : vector<1x1x32x16xf32> to vector<32x16xf32>
    %cst_33 = arith.constant dense<0.000000e+00> : vector<16x16xf32>
    %89 = tpu.matmul %2, %88, %cst_33 {dimension_numbers = #tpu.dot_dimension_numbers<[1], [0], [0], [1], [0, 0, 1, 1], [], []>} : vector<16x32xf32>, vector<32x16xf32>, vector<16x16xf32> -> vector<16x16xf32>
    %90 = vector.extract_strided_slice %4 {offsets = [2, 1, 0, 0], sizes = [1, 1, 1, 16], strides = [1, 1, 1, 1]} : vector<3x2x1x16xf32> to vector<1x1x1x16xf32>
    %91 = vector.shape_cast %90 : vector<1x1x1x16xf32> to vector<1x16xf32>
    %92 = vector.broadcast %91 : vector<1x16xf32> to vector<16x16xf32>
    %93 = arith.addf %89, %92 : vector<16x16xf32>
    %94 = vector.extract_strided_slice %79 {offsets = [0, 0], sizes = [8, 16], strides = [1, 1]} : vector<16x16xf32> to vector<8x16xf32>
    %95 = vector.extract_strided_slice %86 {offsets = [0, 0], sizes = [8, 16], strides = [1, 1]} : vector<16x16xf32> to vector<8x16xf32>
    %96 = vector.extract_strided_slice %93 {offsets = [0, 0], sizes = [8, 16], strides = [1, 1]} : vector<16x16xf32> to vector<8x16xf32>
    %cst_34 = arith.constant dense<0.000000e+00> : vector<8x8xf32>
    %97 = tpu.matmul %94, %95, %cst_34 {dimension_numbers = #tpu.dot_dimension_numbers<[1], [1], [0], [0], [0, 0, 1, 0], [], []>} : vector<8x16xf32>, vector<8x16xf32>, vector<8x8xf32> -> vector<8x8xf32>
    %cst_35 = arith.constant 2.500000e-01 : f32
    %98 = vector.broadcast %cst_35 : f32 to vector<8x8xf32>
    %99 = arith.mulf %97, %98 : vector<8x8xf32>
    %cst_36 = arith.constant dense<0xFF800000> : vector<8xf32>
    %100 = vector.multi_reduction <maximumf>, %99, %cst_36 [1] : vector<8x8xf32> to vector<8xf32>
    %101 = vector.shape_cast %100 : vector<8xf32> to vector<8x1xf32>
    %102 = vector.broadcast %101 : vector<8x1xf32> to vector<8x8xf32>
    %103 = arith.subf %99, %102 : vector<8x8xf32>
    %104 = math.exp %103 : vector<8x8xf32>
    %cst_37 = arith.constant dense<0.000000e+00> : vector<8xf32>
    %105 = vector.multi_reduction <add>, %104, %cst_37 [1] : vector<8x8xf32> to vector<8xf32>
    %106 = vector.shape_cast %105 : vector<8xf32> to vector<8x1xf32>
    %107 = tpu.reciprocal %106 {approx = true} : vector<8x1xf32> -> vector<8x1xf32>
    %108 = vector.broadcast %107 : vector<8x1xf32> to vector<8x8xf32>
    %109 = arith.mulf %104, %108 : vector<8x8xf32>
    %cst_38 = arith.constant dense<0.000000e+00> : vector<8x16xf32>
    %110 = tpu.matmul %109, %96, %cst_38 {dimension_numbers = #tpu.dot_dimension_numbers<[1], [0], [0], [1], [0, 0, 1, 1], [], []>} : vector<8x8xf32>, vector<8x16xf32>, vector<8x16xf32> -> vector<8x16xf32>
    %111 = vector.extract_strided_slice %79 {offsets = [8, 0], sizes = [8, 16], strides = [1, 1]} : vector<16x16xf32> to vector<8x16xf32>
    %112 = vector.extract_strided_slice %86 {offsets = [8, 0], sizes = [8, 16], strides = [1, 1]} : vector<16x16xf32> to vector<8x16xf32>
    %113 = vector.extract_strided_slice %93 {offsets = [8, 0], sizes = [8, 16], strides = [1, 1]} : vector<16x16xf32> to vector<8x16xf32>
    %cst_39 = arith.constant dense<0.000000e+00> : vector<8x8xf32>
    %114 = tpu.matmul %111, %112, %cst_39 {dimension_numbers = #tpu.dot_dimension_numbers<[1], [1], [0], [0], [0, 0, 1, 0], [], []>} : vector<8x16xf32>, vector<8x16xf32>, vector<8x8xf32> -> vector<8x8xf32>
    %cst_40 = arith.constant 2.500000e-01 : f32
    %115 = vector.broadcast %cst_40 : f32 to vector<8x8xf32>
    %116 = arith.mulf %114, %115 : vector<8x8xf32>
    %cst_41 = arith.constant dense<0xFF800000> : vector<8xf32>
    %117 = vector.multi_reduction <maximumf>, %116, %cst_41 [1] : vector<8x8xf32> to vector<8xf32>
    %118 = vector.shape_cast %117 : vector<8xf32> to vector<8x1xf32>
    %119 = vector.broadcast %118 : vector<8x1xf32> to vector<8x8xf32>
    %120 = arith.subf %116, %119 : vector<8x8xf32>
    %121 = math.exp %120 : vector<8x8xf32>
    %cst_42 = arith.constant dense<0.000000e+00> : vector<8xf32>
    %122 = vector.multi_reduction <add>, %121, %cst_42 [1] : vector<8x8xf32> to vector<8xf32>
    %123 = vector.shape_cast %122 : vector<8xf32> to vector<8x1xf32>
    %124 = tpu.reciprocal %123 {approx = true} : vector<8x1xf32> -> vector<8x1xf32>
    %125 = vector.broadcast %124 : vector<8x1xf32> to vector<8x8xf32>
    %126 = arith.mulf %121, %125 : vector<8x8xf32>
    %cst_43 = arith.constant dense<0.000000e+00> : vector<8x16xf32>
    %127 = tpu.matmul %126, %113, %cst_43 {dimension_numbers = #tpu.dot_dimension_numbers<[1], [0], [0], [1], [0, 0, 1, 1], [], []>} : vector<8x8xf32>, vector<8x16xf32>, vector<8x16xf32> -> vector<8x16xf32>
    %128 = tpu.concatenate %110, %127 in 0 : vector<8x16xf32>, vector<8x16xf32> -> vector<16x16xf32>
    %129 = vector.extract_strided_slice %5 {offsets = [1, 0, 0], sizes = [1, 16, 32], strides = [1, 1, 1]} : vector<2x16x32xf32> to vector<1x16x32xf32>
    %130 = vector.shape_cast %129 : vector<1x16x32xf32> to vector<16x32xf32>
    %cst_44 = arith.constant dense<0.000000e+00> : vector<16x32xf32>
    %131 = tpu.matmul %128, %130, %cst_44 {dimension_numbers = #tpu.dot_dimension_numbers<[1], [0], [0], [1], [0, 0, 1, 1], [], []>} : vector<16x16xf32>, vector<16x32xf32>, vector<16x32xf32> -> vector<16x32xf32>
    %132 = arith.addf %72, %131 : vector<16x32xf32>
    %133 = vector.broadcast %7 : vector<1x32xf32> to vector<16x32xf32>
    %134 = arith.addf %132, %133 : vector<16x32xf32>
    %135 = arith.addf %134, %2 : vector<16x32xf32>
    %cst_45 = arith.constant dense<0.000000e+00> : vector<16xf32>
    %136 = vector.multi_reduction <add>, %135, %cst_45 [1] : vector<16x32xf32> to vector<16xf32>
    %137 = vector.shape_cast %136 : vector<16xf32> to vector<16x1xf32>
    %cst_46 = arith.constant 3.200000e+01 : f32
    %138 = vector.broadcast %cst_46 : f32 to vector<16x1xf32>
    %139 = arith.divf %137, %138 : vector<16x1xf32>
    %140 = vector.broadcast %139 : vector<16x1xf32> to vector<16x32xf32>
    %141 = arith.subf %135, %140 : vector<16x32xf32>
    %142 = arith.mulf %141, %141 : vector<16x32xf32>
    %cst_47 = arith.constant dense<0.000000e+00> : vector<16xf32>
    %143 = vector.multi_reduction <add>, %142, %cst_47 [1] : vector<16x32xf32> to vector<16xf32>
    %144 = vector.shape_cast %143 : vector<16xf32> to vector<16x1xf32>
    %cst_48 = arith.constant 3.200000e+01 : f32
    %145 = vector.broadcast %cst_48 : f32 to vector<16x1xf32>
    %146 = arith.divf %144, %145 : vector<16x1xf32>
    %cst_49 = arith.constant 9.99999974E-6 : f32
    %147 = vector.broadcast %cst_49 : f32 to vector<16x1xf32>
    %148 = arith.addf %146, %147 : vector<16x1xf32>
    %149 = math.rsqrt %148 : vector<16x1xf32>
    %150 = vector.broadcast %149 : vector<16x1xf32> to vector<16x32xf32>
    %151 = arith.mulf %141, %150 : vector<16x32xf32>
    %152 = vector.broadcast %8 : vector<1x32xf32> to vector<16x32xf32>
    %153 = arith.mulf %151, %152 : vector<16x32xf32>
    %154 = vector.broadcast %9 : vector<1x32xf32> to vector<16x32xf32>
    %155 = arith.addf %153, %154 : vector<16x32xf32>
    %c0_50 = arith.constant 0 : index
    %c0_51 = arith.constant 0 : index
    %156 = vector.load %arg7[%c0_50, %c0_51] : memref<32x64xf32, #tpu.memory_space<vmem>>, vector<32x64xf32>
    %cst_52 = arith.constant dense<0.000000e+00> : vector<16x64xf32>
    %157 = tpu.matmul %155, %156, %cst_52 {dimension_numbers = #tpu.dot_dimension_numbers<[1], [0], [0], [1], [0, 0, 1, 1], [], []>} : vector<16x32xf32>, vector<32x64xf32>, vector<16x64xf32> -> vector<16x64xf32>
    %158 = vector.broadcast %10 : vector<1x64xf32> to vector<16x64xf32>
    %159 = arith.addf %157, %158 : vector<16x64xf32>
    %cst_53 = arith.constant 5.000000e-01 : f32
    %160 = vector.broadcast %cst_53 : f32 to vector<16x64xf32>
    %161 = arith.mulf %160, %159 : vector<16x64xf32>
    %cst_54 = arith.constant 0.707106769 : f32
    %162 = vector.broadcast %cst_54 : f32 to vector<16x64xf32>
    %163 = arith.mulf %159, %162 : vector<16x64xf32>
    %164 = math.erf %163 : vector<16x64xf32>
    %cst_55 = arith.constant 1.000000e+00 : f32
    %165 = vector.broadcast %cst_55 : f32 to vector<16x64xf32>
    %166 = arith.addf %165, %164 : vector<16x64xf32>
    %167 = arith.mulf %161, %166 : vector<16x64xf32>
    %c0_56 = arith.constant 0 : index
    %c0_57 = arith.constant 0 : index
    %168 = vector.load %arg8[%c0_56, %c0_57] : memref<64x32xf32, #tpu.memory_space<vmem>>, vector<64x32xf32>
    %cst_58 = arith.constant dense<0.000000e+00> : vector<16x32xf32>
    %169 = tpu.matmul %167, %168, %cst_58 {dimension_numbers = #tpu.dot_dimension_numbers<[1], [0], [0], [1], [0, 0, 1, 1], [], []>} : vector<16x64xf32>, vector<64x32xf32>, vector<16x32xf32> -> vector<16x32xf32>
    %170 = vector.broadcast %11 : vector<1x32xf32> to vector<16x32xf32>
    %171 = arith.addf %169, %170 : vector<16x32xf32>
    %cst_59 = arith.constant 5.000000e-01 : f32
    %172 = vector.broadcast %cst_59 : f32 to vector<16x32xf32>
    %173 = arith.mulf %172, %171 : vector<16x32xf32>
    %cst_60 = arith.constant 0.707106769 : f32
    %174 = vector.broadcast %cst_60 : f32 to vector<16x32xf32>
    %175 = arith.mulf %171, %174 : vector<16x32xf32>
    %176 = math.erf %175 : vector<16x32xf32>
    %cst_61 = arith.constant 1.000000e+00 : f32
    %177 = vector.broadcast %cst_61 : f32 to vector<16x32xf32>
    %178 = arith.addf %177, %176 : vector<16x32xf32>
    %179 = arith.mulf %173, %178 : vector<16x32xf32>
    %180 = arith.addf %179, %2 : vector<16x32xf32>
    %cst_62 = arith.constant dense<0.000000e+00> : vector<16xf32>
    %181 = vector.multi_reduction <add>, %180, %cst_62 [1] : vector<16x32xf32> to vector<16xf32>
    %182 = vector.shape_cast %181 : vector<16xf32> to vector<16x1xf32>
    %cst_63 = arith.constant 3.200000e+01 : f32
    %183 = vector.broadcast %cst_63 : f32 to vector<16x1xf32>
    %184 = arith.divf %182, %183 : vector<16x1xf32>
    %185 = vector.broadcast %184 : vector<16x1xf32> to vector<16x32xf32>
    %186 = arith.subf %180, %185 : vector<16x32xf32>
    %187 = arith.mulf %186, %186 : vector<16x32xf32>
    %cst_64 = arith.constant dense<0.000000e+00> : vector<16xf32>
    %188 = vector.multi_reduction <add>, %187, %cst_64 [1] : vector<16x32xf32> to vector<16xf32>
    %189 = vector.shape_cast %188 : vector<16xf32> to vector<16x1xf32>
    %cst_65 = arith.constant 3.200000e+01 : f32
    %190 = vector.broadcast %cst_65 : f32 to vector<16x1xf32>
    %191 = arith.divf %189, %190 : vector<16x1xf32>
    %cst_66 = arith.constant 9.99999974E-6 : f32
    %192 = vector.broadcast %cst_66 : f32 to vector<16x1xf32>
    %193 = arith.addf %191, %192 : vector<16x1xf32>
    %194 = math.rsqrt %193 : vector<16x1xf32>
    %195 = vector.broadcast %194 : vector<16x1xf32> to vector<16x32xf32>
    %196 = arith.mulf %186, %195 : vector<16x32xf32>
    %197 = vector.broadcast %12 : vector<1x32xf32> to vector<16x32xf32>
    %198 = arith.mulf %196, %197 : vector<16x32xf32>
    %199 = vector.broadcast %13 : vector<1x32xf32> to vector<16x32xf32>
    %200 = arith.addf %198, %199 : vector<16x32xf32>
    %c0_67 = arith.constant 0 : index
    %c0_68 = arith.constant 0 : index
    %201 = vector.load %arg9[%c0_67, %c0_68] : memref<16x32xf32, #tpu.memory_space<vmem>>, vector<16x32xf32>
    tpu.vector_store %arg9[%c0_67, %c0_68], %200 {strides = array<i32>} : memref<16x32xf32, #tpu.memory_space<vmem>>, vector<16x32xf32>,
    return
  }
}

</mosaic_0001>

<bundles_post_ra>
// kernel: transformer_block.1
= control target key start
LH: loop header
LB: loop body
LE: loop exit
PB: predicated region body
PF: predicated region fallthrough
CT: control target
= control target key end

     0   :  { %vm80_vm0 = vcmask 261120   ;;  %s2355_s0 = inlined_call_operand.vmem [shape: f32[16,32], index: 0, kind: input, shape index: {}]   ;;  %s2356_s1 = inlined_call_operand.vmem [shape: f32[16,32], index: 1, kind: input, shape index: {}]   ;;  %s2357_s2 = inlined_call_operand.vmem [shape: f32[16,32], index: 2, kind: input, shape index: {}]   ;;  %s2358_s3 = inlined_call_operand.vmem [shape: f32[3,2,32,16], index: 3, kind: input, shape index: {}]   ;;  %s2359_s4 = inlined_call_operand.vmem [shape: f32[3,2,1,16], index: 4, kind: input, shape index: {}]   ;;  %s2360_s5 = inlined_call_operand.vmem [shape: f32[2,16,32], index: 5, kind: input, shape index: {}]   ;;  %s2361_s6 = inlined_call_operand.vmem [shape: f32[8,64], index: 6, kind: input, shape index: {}]   ;;  %s2362_s7 = inlined_call_operand.vmem [shape: f32[32,64], index: 7, kind: input, shape index: {}]   ;;  %s2363_s8 = inlined_call_operand.vmem [shape: f32[64,32], index: 8, kind: input, shape index: {}]   ;;  %s2364_s9 = inlined_call_operand.hbm [shape: f32[16,32], index: 9, kind: output, shape index: {}]  }
   0x1   :  { %v50_v0 = vld [vmem:[%s2358_s3 + $0x58] sm:$0xff]  ;;  %v49_v2 = vld [vmem:[%s2358_s3 + $0x50] sm:$0xff]  ;;  %v48_v4 = vld [vmem:[%s2358_s3 + $0x48] sm:$0xff] }
   0x2   :  { %v42_v1 = vld [vmem:[%s2358_s3 + $0x18] sm:$0xff]  ;;  %1820 = vmatprep.subr.mxu1 %v50_v0  ;;  %v41_v3 = vld [vmem:[%s2358_s3 + $0x10] sm:$0xff]  ;;  %v40_v5 = vld [vmem:[%s2358_s3 + $0x8] sm:$0xff] }
   0x3   :  { %1809 = vmatprep.subr.mxu0 %v42_v1  ;;  %1821 = vmatpush3.msra.mxu1 %v50_v0  ;;  %v47_v6 = vld [vmem:[%s2358_s3 + $0x40] sm:$0xff] }
   0x4   :  { %1810 = vmatpush3.msra.mxu0 %v42_v1  ;;  %1822 = vmatprep.subr.mxu1 %v49_v2  ;;  %v39_v7 = vld [vmem:[%s2358_s3] sm:$0xff] }
   0x5   :  { %1811 = vmatprep.subr.mxu0 %v41_v3  ;;  %1823 = vmatpush3.msra.mxu1 %v49_v2  ;;  %v2100_v8 = vld [vmem:[%s2356_s1] sm:$0xff] }
   0x6   :  { %1812 = vmatpush3.msra.mxu0 %v41_v3  ;;  %1824 = vmatprep.subr.mxu1 %v48_v4 }
   0x7   :  { %1813 = vmatprep.subr.mxu0 %v40_v5 }
   0x8   :  { %14 = vsyncpa [#allocation3], 0  ;;  %1825 = vmatpush3.msra.mxu1 %v48_v4  ;;  %1814 = vmatpush3.msra.mxu0 %v40_v5  ;;  %v33_v9 = vld [vmem:[%s2355_s0] sm:$0xff]  ;;  %v2108_v10 = vld [vmem:[%s2356_s1 + $0x8] sm:$0xff]  ;;  %v2018_v18 = vmov 0.0   ;;  %vm2019_vm1 = vmmov 0  }
   0x9   :  { %1826 = vmatprep.subr.mxu1 %v47_v6  ;;  %1815 = vmatprep.subr.mxu0 %v39_v7  ;;  %v2113_v11 = vld [vmem:[%s2355_s0 + $0x8] sm:$0xff]  ;;  %v58_v12 = vld [vmem:[%s2358_s3 + $0x98] sm:$0xff]  ;;  %v57_v13 = vld [vmem:[%s2358_s3 + $0x90] sm:$0xff]  ;;  %vm336_vm2 = vcmask 130048   ;;  %vm414_vm3 = vcmask 64512   ;;  %vm1545_vm4 = vcmask 523264  }
   0xa   :  { %1827 = vmatpush3.msra.mxu1 %v47_v6  ;;  %1828 = vmatprep.mubr.msk.f32.mxu1 %vm80_vm0, %v2100_v8  ;;  %v56_v14 = vld [vmem:[%s2358_s3 + $0x88] sm:$0xff]  ;;  %v55_v15 = vld [vmem:[%s2358_s3 + $0x80] sm:$0xff]  ;;  %v46_v52 = vld [vmem:[%s2358_s3 + $0x38] sm:$0xff] }
   0xb   :  { %1816 = vmatpush3.msra.mxu0 %v39_v7  ;;  %1817 = vmatprep.mubr.msk.f32.mxu0 %vm80_vm0, %v33_v9  ;;  %v2137_v16 = vld [vmem:[%s2357_s2] sm:$0xff]  ;;  %v2144_v17 = vld [vmem:[%s2357_s2 + $0x8] sm:$0xff]  ;;  %v45_v53 = vld [vmem:[%s2358_s3 + $0x30] sm:$0xff] }
   0xc   :  { %1829 = vmatmul.mubr.msk.f32.vlgmr.msra.gmra.mxu1 %vm80_vm0, %v2108_v10  ;;  %1818 = vmatmul.mubr.msk.f32.vlgmr.msra.gmra.mxu0 %vm80_vm0, %v2113_v11  ;;  %v1698_v21 = vld [vmem:[%s2359_s4 + $0x2] ss:$0 sm:$0xff]  ;;  %v1695_v23 = vld [vmem:[%s2359_s4] ss:$0 sm:$0xff]  ;;  %v1701_v29 = vld [vmem:[%s2359_s4 + $0x4] ss:$0 sm:$0xff] }
   0xd   :  { %1831 = vmatprep.subr.mxu0 %v58_v12  ;;  %1839 = vmatprep.mubr.msk.f32.mxu0 %vm80_vm0, %v2137_v16  ;;  %v44_v54 = vld [vmem:[%s2358_s3 + $0x28] sm:$0xff]  ;;  %v43_v55 = vld [vmem:[%s2358_s3 + $0x20] sm:$0xff]  ;;  %v54_v60 = vld [vmem:[%s2358_s3 + $0x78] sm:$0xff] }
   0xe   :  { %1832 = vmatpush3.msra.mxu0 %v58_v12  ;;  %1847 = vmatprep.subr.mxu1 %v2018_v18  ;;  %v53_v63 = vld [vmem:[%s2358_s3 + $0x70] sm:$0xff]  ;;  %v52_v0 = vld [vmem:[%s2358_s3 + $0x68] sm:$0xff]  ;;  %v51_v1 = vld [vmem:[%s2358_s3 + $0x60] sm:$0xff] }
   0xf   :  { %1833 = vmatprep.subr.mxu0 %v57_v13  ;;  %1849 = vmatprep.mubr.msk.f32.mxu1 %vm2019_vm1, %v2018_v18  ;;  %v62_v2 = vld [vmem:[%s2358_s3 + $0xb8] sm:$0xff]  ;;  %v61_v3 = vld [vmem:[%s2358_s3 + $0xb0] sm:$0xff]  ;;  %v60_v4 = vld [vmem:[%s2358_s3 + $0xa8] sm:$0xff] }
  0x10   :  { %1834 = vmatpush3.msra.mxu0 %v57_v13  ;;  %v59_v5 = vld [vmem:[%s2358_s3 + $0xa0] sm:$0xff] }
  0x11   :  { %1835 = vmatprep.subr.mxu0 %v56_v14  ;;  %v1710_v12 = vld [vmem:[%s2359_s4 + $0x1] ss:$0 sm:$0xff] }
  0x12   :  { %1836 = vmatpush3.msra.mxu0 %v56_v14 }
  0x13   :  { %1837 = vmatprep.subr.mxu0 %v55_v15 }
  0x14   :  { %1838 = vmatpush3.msra.mxu0 %v55_v15 }
  0x15   :  { %1840 = vmatmul.mubr.msk.f32.vlgmr.msra.gmra.mxu0 %vm80_vm0, %v2144_v17  ;;  %1842 = vmatprep.subr.mxu0 %v2018_v18 }
  0x16   :  { %1844 = vmatprep.mubr.msk.f32.mxu0 %vm2019_vm1, %v2018_v18 }
  0xcc   :  { %v1830_v19 = vpop.f32.mrf.mxu1  ;;  %v1819_v20 = vpop.f32.mrf.mxu0 }
  0xcd   :  { %v246_v27 = vadd.f32 %v1830_v19, %v1698_v21  ;;  %v159_v28 = vadd.f32 %v1819_v20, %v1695_v23 }
  0xce   :  { %v240_v22 = vpop.f32.mrf.mxu1  ;;  %v153_v25 = vpop.f32.mrf.mxu0 }
  0xcf   :  { %v241_v24 = vadd.f32 %v1698_v21, %v240_v22  ;;  %v154_v26 = vadd.f32 %v1695_v23, %v153_v25  ;;  %v1716_v23 = vld [vmem:[%s2359_s4 + $0x5] ss:$0 sm:$0xff] }
  0xd1   :  { %1843 = vmatpush3.xpose.msk.msra.mxu0 %vm336_vm2, %v241_v24 }
  0xd2   :  { %1852 = vmatprep.subr.mxu0 %v2018_v18 }
  0xd4   :  { %1845 = vmatmul.mubr.msk.f32.vlgmr.msra.gmra.mxu0 %vm336_vm2, %v154_v26 }
  0xd5   :  { %1853 = vmatpush3.xpose.msk.msra.mxu0 %vm336_vm2, %v246_v27  ;;  %1854 = vmatprep.mubr.msk.f32.mxu0 %vm2019_vm1, %v2018_v18  ;;  %v1841_v30 = vpop.f32.mrf.mxu0 }
  0xd6   :  { %v333_v31 = vadd.f32 %v1841_v30, %v1701_v29  ;;  %1862 = vmatprep.subr.mxu0 %v46_v52 }
  0xd7   :  { %v327_v32 = vpop.f32.mrf.mxu0 }
  0xd8   :  { %1855 = vmatmul.mubr.msk.f32.vlgmr.msra.gmra.mxu0 %vm336_vm2, %v159_v28  ;;  %v328_v33 = vadd.f32 %v1701_v29, %v327_v32 }
  0xd9   :  { %1870 = vmatprep.mubr.msk.f32.mxu0 %vm80_vm0, %v33_v9  ;;  %1863 = vmatpush3.msra.mxu0 %v46_v52 }
  0xda   :  { %1848 = vmatpush3.msra.mxu1 %v328_v33  ;;  %1864 = vmatprep.subr.mxu0 %v45_v53 }
  0xdb   :  { %1857 = vmatprep.subr.mxu1 %v2018_v18  ;;  %1865 = vmatpush3.msra.mxu0 %v45_v53  ;;  %v69_v53 = vld [vmem:[%s2360_s5] sm:$0xff] }
  0xdc   :  { %1866 = vmatprep.subr.mxu0 %v44_v54 }
  0xdd   :  { %1867 = vmatpush3.msra.mxu0 %v44_v54  ;;  %v71_v54 = vld [vmem:[%s2360_s5 + $0x10] sm:$0xff] }
  0xde   :  { %1868 = vmatprep.subr.mxu0 %v43_v55 }
  0xdf   :  { %1869 = vmatpush3.msra.mxu0 %v43_v55 }
  0xe0   :  { %1871 = vmatmul.mubr.msk.f32.vlgmr.msra.gmra.mxu0 %vm80_vm0, %v2113_v11  ;;  %1884 = vmatprep.subr.mxu0 %v62_v2 }
  0xe1   :  { %1892 = vmatprep.mubr.msk.f32.mxu0 %vm80_vm0, %v2137_v16  ;;  %1885 = vmatpush3.msra.mxu0 %v62_v2 }
  0xe2   :  { %1886 = vmatprep.subr.mxu0 %v61_v3 }
  0xe3   :  { %1887 = vmatpush3.msra.mxu0 %v61_v3 }
  0xe4   :  { %1888 = vmatprep.subr.mxu0 %v60_v4 }
  0xe5   :  { %1889 = vmatpush3.msra.mxu0 %v60_v4 }
  0xe6   :  { %1890 = vmatprep.subr.mxu0 %v59_v5 }
  0xe7   :  { %1891 = vmatpush3.msra.mxu0 %v59_v5 }
  0xe8   :  { %1893 = vmatmul.mubr.msk.f32.vlgmr.msra.gmra.mxu0 %vm80_vm0, %v2144_v17  ;;  %1905 = vmatprep.subr.mxu0 %v2018_v18 }
  0xe9   :  { %1907 = vmatprep.mubr.msk.f32.mxu0 %vm2019_vm1, %v2018_v18 }
 0x194   :  { %v409_v34 = vpop.f32.mrf.mxu0 }
 0x195   :  { %v413_v35 = vmul.f32 0.25, %v409_v34 }
 0x196   :  { %v1846_v36 = vpop.f32.mrf.mxu0 }
 0x197   :  { %v415_v37 = vsel %vm414_vm3, %v413_v35, -inf }
 0x198   :  { %416 = vmax.xlane.f32.xlu0 %v415_v37  ;;  %v571_v38 = vpop.f32.mrf.mxu0 }
 0x199   :  { %v575_v39 = vmul.f32 0.25, %v571_v38 }
 0x19a   :  { %v1856_v40 = vpop.f32.mrf.mxu0 }
 0x19b   :  { %v576_v41 = vsel %vm414_vm3, %v575_v39, -inf }
 0x19c   :  { %577 = vmax.xlane.f32.xlu0 %v576_v41 }
 0x1a0   :  { %v1872_v11 = vpop.f32.mrf.mxu0 }
 0x1a1   :  { %v738_v15 = vadd.f32 %v1872_v11, %v1710_v12 }
 0x1a2   :  { %v732_v21 = vpop.f32.mrf.mxu0 }
 0x1a3   :  { %v733_v22 = vadd.f32 %v1710_v12, %v732_v21 }
 0x1a8   :  { %v1894_v24 = vpop.f32.mrf.mxu0 }
 0x1a9   :  { %v900_v25 = vadd.f32 %v1894_v24, %v1716_v23 }
 0x1aa   :  { %v894_v26 = vpop.f32.mrf.mxu0 }
 0x1ab   :  { %v895_v27 = vadd.f32 %v1716_v23, %v894_v26  ;;  %v1436_v26 = vld [vmem:[%s2362_s7 + $0x10] sm:$0xff] }
 0x221   :  { %v417_v42 = vpop.xlane.xlu0 %416 }
 0x222   :  { %v418_v43 = vsub.f32 %v413_v35, %v417_v42 }
 0x224   :  { %v419_v44 = vmul.f32 1.442695, %v418_v43 }
 0x225   :  { %v578_v45 = vpop.xlane.xlu0 %577 }
 0x226   :  { %1964 = vpow2.f32 %v419_v44  ;;  %v579_v46 = vsub.f32 %v575_v39, %v578_v45 }
 0x228   :  { %v580_v47 = vmul.f32 1.442695, %v579_v46 }
 0x22a   :  { %1966 = vpow2.f32 %v580_v47 }
 0x233   :  { %v1965_v48 = vpop.eup %1964 }
 0x234   :  { %v421_v49 = vsel %vm414_vm3, %v1965_v48, 0.0 }
 0x235   :  { %422 = vadd.xlane.f32.xlu1 %v421_v49 }
 0x237   :  { %v1967_v50 = vpop.eup %1966 }
 0x238   :  { %v582_v51 = vsel %vm414_vm3, %v1967_v50, 0.0 }
 0x239   :  { %583 = vadd.xlane.f32.xlu1 %v582_v51  ;;  %v70_v51 = vld [vmem:[%s2360_s5 + $0x8] sm:$0xff] }
 0x2be   :  { %v423_v56 = vpop.xlane.xlu1 %422 }
 0x2bf   :  { %1968 = vrcp.f32 %v423_v56 }
 0x2c2   :  { %v584_v57 = vpop.xlane.xlu1 %583 }
 0x2c3   :  { %1970 = vrcp.f32 %v584_v57 }
 0x2cc   :  { %v1969_v58 = vpop.eup %1968 }
 0x2cd   :  { %v425_v59 = vmul.f32 %v1969_v58, %v1965_v48 }
 0x2cf   :  { %1850 = vmatmul.mubr.msk.f32.vlgmr.msra.gmra.mxu1 %vm414_vm3, %v425_v59  ;;  %v1387_v59 = vlaneseq }
 0x2d0   :  { %v1971_v61 = vpop.eup %1970  ;;  %1858 = vmatpush3.msra.mxu1 %v333_v31  ;;  %1859 = vmatprep.mubr.msk.f32.mxu1 %vm2019_vm1, %v2018_v18 }
 0x2d1   :  { %1873 = vmatprep.subr.mxu1 %v54_v60  ;;  %v586_v62 = vmul.f32 %v1971_v61, %v1967_v50 }
 0x2d3   :  { %1860 = vmatmul.mubr.msk.f32.vlgmr.msra.gmra.mxu1 %vm414_vm3, %v586_v62  ;;  %v2285_v62 = vld [vmem:[%s2361_s6] sm:$0xff] }
 0x2d4   :  { %1874 = vmatpush3.msra.mxu1 %v54_v60  ;;  %1881 = vmatprep.mubr.msk.f32.mxu1 %vm80_vm0, %v2100_v8  ;;  %v2279_v60 = vshrl.u32 %v1387_v59, 7 }
 0x2d5   :  { %1875 = vmatprep.subr.mxu1 %v53_v63 }
 0x2d6   :  { %1876 = vmatpush3.msra.mxu1 %v53_v63  ;;  %v1389_v61 = vsub.s32 0, %v2279_v60 }
 0x2d7   :  { %1877 = vmatprep.subr.mxu1 %v52_v0 }
 0x2d8   :  { %1878 = vmatpush3.msra.mxu1 %v52_v0  ;;  %v1390_v0 = vrot.slane %v2285_v62, %v1389_v61 }
 0x2d9   :  { %1879 = vmatprep.subr.mxu1 %v51_v1 }
 0x2da   :  { %1880 = vmatpush3.msra.mxu1 %v51_v1 }
 0x2db   :  { %1882 = vmatmul.mubr.msk.f32.vlgmr.msra.gmra.mxu1 %vm80_vm0, %v2108_v10  ;;  %1895 = vmatprep.subr.mxu1 %v2018_v18  ;;  %v1713_v10 = vld [vmem:[%s2359_s4 + $0x3] ss:$0 sm:$0xff] }
 0x2dc   :  { %1897 = vmatprep.mubr.msk.f32.mxu1 %vm2019_vm1, %v2018_v18 }
 0x38f   :  { %v2232_v6 = vpop.f32.mrf.mxu1 }
 0x391   :  { %v1851_v7 = vpop.f32.mrf.mxu1 }
 0x393   :  { %v2234_v8 = vpop.f32.mrf.mxu1 }
 0x395   :  { %v1861_v9 = vpop.f32.mrf.mxu1 }
 0x39b   :  { %v1883_v13 = vpop.f32.mrf.mxu1 }
 0x39c   :  { %v819_v14 = vadd.f32 %v1883_v13, %v1713_v10 }
 0x39d   :  { %v813_v19 = vpop.f32.mrf.mxu1 }
 0x39e   :  { %v814_v20 = vadd.f32 %v1713_v10, %v813_v19  ;;  %1906 = vmatpush3.xpose.msk.msra.mxu0 %vm336_vm2, %v819_v14 }
 0x3a0   :  { %1896 = vmatpush3.xpose.msk.msra.mxu1 %vm336_vm2, %v814_v20 }
 0x3a1   :  { %1908 = vmatmul.mubr.msk.f32.vlgmr.msra.gmra.mxu0 %vm336_vm2, %v738_v15  ;;  %1900 = vmatprep.subr.mxu1 %v2018_v18 }
 0x3a3   :  { %1898 = vmatmul.mubr.msk.f32.vlgmr.msra.gmra.mxu1 %vm336_vm2, %v733_v22 }
 0x3a4   :  { %1902 = vmatprep.mubr.msk.f32.mxu1 %vm2019_vm1, %v2018_v18  ;;  %1901 = vmatpush3.msra.mxu1 %v895_v27  ;;  %v1435_v27 = vld [vmem:[%s2362_s7 + $0x8] sm:$0xff] }
 0x3a5   :  { %1910 = vmatprep.subr.mxu1 %v2018_v18 }
 0x461   :  { %v1136_v28 = vpop.f32.mrf.mxu0 }
 0x462   :  { %v1140_v29 = vmul.f32 0.25, %v1136_v28  ;;  %v1434_v28 = vld [vmem:[%s2362_s7] sm:$0xff] }
 0x463   :  { %v975_v30 = vpop.f32.mrf.mxu1  ;;  %v1909_v31 = vpop.f32.mrf.mxu0 }
 0x464   :  { %v979_v32 = vmul.f32 0.25, %v975_v30  ;;  %v1141_v33 = vsel %vm414_vm3, %v1140_v29, -inf }
 0x465   :  { %1142 = vmax.xlane.f32.xlu1 %v1141_v33  ;;  %v1899_v34 = vpop.f32.mrf.mxu1 }
 0x466   :  { %v980_v35 = vsel %vm414_vm3, %v979_v32, -inf }
 0x467   :  { %981 = vmax.xlane.f32.xlu0 %v980_v35  ;;  %v1424_v35 = vsub.s32 1, %v2279_v60 }
 0x4ee   :  { %v1143_v36 = vpop.xlane.xlu1 %1142 }
 0x4ef   :  { %v1144_v37 = vsub.f32 %v1140_v29, %v1143_v36 }
 0x4f0   :  { %v982_v38 = vpop.xlane.xlu0 %981 }
 0x4f1   :  { %v1145_v39 = vmul.f32 1.442695, %v1144_v37  ;;  %v983_v40 = vsub.f32 %v979_v32, %v982_v38  ;;  %v1425_v37 = vrot.slane %v2285_v62, %v1424_v35  ;;  %v1430_v38 = vsub.s32 2, %v2279_v60 }
 0x4f3   :  { %1972 = vpow2.f32 %v1145_v39  ;;  %v984_v41 = vmul.f32 1.442695, %v983_v40 }
 0x4f5   :  { %1974 = vpow2.f32 %v984_v41 }
 0x500   :  { %v1973_v42 = vpop.eup %1972 }
 0x501   :  { %v1147_v43 = vsel %vm414_vm3, %v1973_v42, 0.0 }
 0x502   :  { %v1975_v44 = vpop.eup %1974  ;;  %1148 = vadd.xlane.f32.xlu1 %v1147_v43  ;;  %v1431_v43 = vrot.slane %v2285_v62, %v1430_v38 }
 0x503   :  { %v986_v45 = vsel %vm414_vm3, %v1975_v44, 0.0 }
 0x504   :  { %987 = vadd.xlane.f32.xlu0 %v986_v45 }
 0x58b   :  { %v1149_v46 = vpop.xlane.xlu1 %1148 }
 0x58d   :  { %v988_v47 = vpop.xlane.xlu0 %987 }
 0x58e   :  { %1976 = vrcp.f32 %v988_v47  ;;  %v1540_v47 = vld [vmem:[%s2363_s8 + $0x38] sm:$0xff] }
 0x58f   :  { %1978 = vrcp.f32 %v1149_v46 }
 0x59b   :  { %v1977_v48 = vpop.eup %1976 }
 0x59c   :  { %v990_v49 = vmul.f32 %v1977_v48, %v1975_v44  ;;  %v1979_v50 = vpop.eup %1978  ;;  %v1539_v48 = vld [vmem:[%s2363_s8 + $0x30] sm:$0xff] }
 0x59d   :  { %v1151_v52 = vmul.f32 %v1979_v50, %v1973_v42  ;;  %v1537_v50 = vld [vmem:[%s2363_s8 + $0x20] sm:$0xff] }
 0x59e   :  { %1903 = vmatmul.mubr.msk.f32.vlgmr.msra.gmra.mxu1 %vm414_vm3, %v990_v49  ;;  %v1538_v49 = vld [vmem:[%s2363_s8 + $0x28] sm:$0xff] }
 0x59f   :  { %1911 = vmatpush3.msra.mxu1 %v900_v25  ;;  %1912 = vmatprep.mubr.msk.f32.mxu1 %vm2019_vm1, %v2018_v18  ;;  %v72_v18 = vld [vmem:[%s2360_s5 + $0x18] sm:$0xff] }
 0x5a0   :  { %1922 = vmatprep.subr.mxu1 %v70_v51  ;;  %1915 = vmatprep.subr.mxu0 %v72_v18  ;;  %v1437_v25 = vld [vmem:[%s2362_s7 + $0x18] sm:$0xff] }
 0x5a1   :  { %1916 = vmatpush3.msra.mxu0 %v72_v18  ;;  %v1533_v18 = vld [vmem:[%s2363_s8] sm:$0xff] }
 0x5a2   :  { %1913 = vmatmul.mubr.msk.f32.vlgmr.msra.gmra.mxu1 %vm414_vm3, %v1151_v52  ;;  %1917 = vmatprep.subr.mxu0 %v71_v54  ;;  %v1535_v52 = vld [vmem:[%s2363_s8 + $0x10] sm:$0xff] }
 0x5a3   :  { %1923 = vmatpush3.msra.mxu1 %v70_v51  ;;  %1926 = vmatprep.mubr.msk.f32.mxu1 %vm336_vm2, %v2232_v6  ;;  %v1536_v51 = vld [vmem:[%s2363_s8 + $0x18] sm:$0xff] }
 0x5a4   :  { %1924 = vmatprep.subr.mxu1 %v69_v53  ;;  %1918 = vmatpush3.msra.mxu0 %v71_v54  ;;  %v1440_v54 = vsub.s32 3, %v2279_v60 }
 0x5a5   :  { %1925 = vmatpush3.msra.mxu1 %v69_v53  ;;  %1929 = vmatprep.subr.mxu0 %v1437_v25  ;;  %v1534_v53 = vld [vmem:[%s2363_s8 + $0x8] sm:$0xff]  ;;  %s2020_s8 = smov [#allocation2]  }
 0x5a6   :  { %1927 = vmatmul.mubr.msk.f32.vlgmr.msra.gmra.mxu1 %vm336_vm2, %v2234_v8  ;;  %1940 = vmatprep.subr.mxu1 %v1540_v47  ;;  %s1684_s0 = sshll.u32 %s2020_s8, 4  ;;  %s1685_s0 = int_to_ptr.vmem [resolvable:$true] %s1684_s0 }
 0x5a7   :  { %1941 = vmatpush3.msra.mxu1 %v1540_v47  ;;  %s1996_s14 = scalar_lea.vmem %s1685_s0, 256  ;;  %p2001_p1 = scmp.lt.s32.totalorder %s1685_s0, %s1685_s0 }
 0x5a8   :  { %1942 = vmatprep.subr.mxu1 %v1539_v48  ;;  %p1997_p0 = scmp.ne.s32.totalorder %s1685_s0, %s1996_s14  ;;  %p2002_p2 = scmp.lt.s32.totalorder %s1996_s14, %s1996_s14 }
 0x5a9   :  { %1943 = vmatpush3.msra.mxu1 %v1539_v48 }
 0x5aa   :  { %1944 = vmatprep.subr.mxu1 %v1538_v49  ;;  %p2003_p3 = por %p2002_p2, %p2001_p1 }
 0x5ab   :  { %1945 = vmatpush3.msra.mxu1 %v1538_v49 }
 0x5ac   :  { %1946 = vmatprep.subr.mxu1 %v1537_v50  ;;  %p2004_p4 = pnand %p2003_p3, %p1997_p0 }
 0x5ad   :  { %1947 = vmatpush3.msra.mxu1 %v1537_v50 }
 0x5ae   :  { %1948 = vmatprep.subr.mxu1 %v1536_v51 }
 0x5af   :  { %1949 = vmatpush3.msra.mxu1 %v1536_v51 }
 0x5b0   :  { %1950 = vmatprep.subr.mxu1 %v1535_v52 }
 0x5b1   :  { %1951 = vmatpush3.msra.mxu1 %v1535_v52 }
 0x5b2   :  { %1952 = vmatprep.subr.mxu1 %v1534_v53 }
 0x5b3   :  { %1953 = vmatpush3.msra.mxu1 %v1534_v53 }
 0x5b4   :  { %1954 = vmatprep.subr.mxu1 %v1533_v18 }
 0x5b5   :  { %1955 = vmatpush3.msra.mxu1 %v1533_v18 }
 0x65e   :  { %v1060_v55 = vpop.f32.mrf.mxu1 }
 0x65f   :  { %1919 = vmatprep.mubr.msk.f32.mxu0 %vm336_vm2, %v1060_v55  ;;  %v1441_v55 = vrot.slane %v2285_v62, %v1440_v54 }
 0x660   :  { %v1904_v56 = vpop.f32.mrf.mxu1 }
 0x662   :  { %v1221_v57 = vpop.f32.mrf.mxu1 }
 0x663   :  { %1920 = vmatmul.mubr.msk.f32.vlgmr.msra.gmra.mxu0 %vm336_vm2, %v1221_v57 }
 0x664   :  { %v1914_v58 = vpop.f32.mrf.mxu1  ;;  %1930 = vmatpush3.msra.mxu0 %v1437_v25 }
 0x665   :  { %1931 = vmatprep.subr.mxu0 %v1436_v26 }
 0x666   :  { %v1928_v63 = vpop.f32.mrf.mxu1  ;;  %1932 = vmatpush3.msra.mxu0 %v1436_v26 }
 0x667   :  { %1933 = vmatprep.subr.mxu0 %v1435_v27 }
 0x668   :  { %v1378_v3 = vpop.f32.mrf.mxu1  ;;  %1934 = vmatpush3.msra.mxu0 %v1435_v27 }
 0x669   :  { %1935 = vmatprep.subr.mxu0 %v1434_v28 }
 0x66a   :  { %1936 = vmatpush3.msra.mxu0 %v1434_v28 }
 0x723   :  { %v1921_v1 = vpop.f32.mrf.mxu0 }
 0x724   :  { %v1384_v2 = vadd.f32 %v1928_v63, %v1921_v1 }
 0x725   :  { %v1297_v4 = vpop.f32.mrf.mxu0 }
 0x726   :  { %v1392_v5 = vadd.f32 %v1390_v0, %v1384_v2  ;;  %v1379_v6 = vadd.f32 %v1378_v3, %v1297_v4 }
 0x728   :  { %v1391_v7 = vadd.f32 %v1390_v0, %v1379_v6  ;;  %v1394_v8 = vadd.f32 %v1392_v5, %v2144_v17 }
 0x72a   :  { %v1398_v9 = vsel %vm80_vm0, %v1394_v8, 0.0  ;;  %v1393_v10 = vadd.f32 %v1391_v7, %v2137_v16 }
 0x72b   :  { %1399 = vadd.xlane.f32.xlu1 %v1398_v9 }
 0x72c   :  { %v1395_v11 = vsel %vm80_vm0, %v1393_v10, 0.0 }
 0x72d   :  { %1396 = vadd.xlane.f32.xlu0 %v1395_v11 }
 0x7b4   :  { %v1400_v12 = vpop.xlane.xlu1 %1399 }
 0x7b5   :  { %v1403_v13 = vmul.f32 0.03125, %v1400_v12 }
 0x7b6   :  { %v1397_v14 = vpop.xlane.xlu0 %1396 }
 0x7b7   :  { %v1405_v15 = vsub.f32 %v1394_v8, %v1403_v13  ;;  %v1402_v19 = vmul.f32 0.03125, %v1397_v14  ;;  %v1543_v8 = vsub.s32 4, %v2279_v60 }
 0x7b9   :  { %v1404_v20 = vsub.f32 %v1393_v10, %v1402_v19  ;;  %v1407_v21 = vmul.f32 %v1405_v15, %v1405_v15  ;;  %v1544_v9 = vrot.slane %v2285_v62, %v1543_v8 }
 0x7bb   :  { %v1411_v22 = vsel %vm80_vm0, %v1407_v21, 0.0  ;;  %v1406_v23 = vmul.f32 %v1404_v20, %v1404_v20 }
 0x7bc   :  { %1412 = vadd.xlane.f32.xlu1 %v1411_v22 }
 0x7bd   :  { %v1408_v24 = vsel %vm80_vm0, %v1406_v23, 0.0 }
 0x7be   :  { %1409 = vadd.xlane.f32.xlu0 %v1408_v24 }
 0x845   :  { %v1413_v29 = vpop.xlane.xlu1 %1412 }
 0x846   :  { %v1415_v30 = vmul.f32 0.03125, %v1413_v29 }
 0x847   :  { %v1410_v31 = vpop.xlane.xlu0 %1409 }
 0x848   :  { %v1417_v32 = vadd.f32 1e-05, %v1415_v30  ;;  %v1414_v33 = vmul.f32 0.03125, %v1410_v31 }
 0x84a   :  { %1980 = vrsqrt.f32 %v1417_v32  ;;  %v1416_v34 = vadd.f32 1e-05, %v1414_v33 }
 0x84c   :  { %1982 = vrsqrt.f32 %v1416_v34 }
 0x857   :  { %v1981_v36 = vpop.eup %1980 }
 0x858   :  { %v1421_v39 = vmul.f32 %v1981_v36, %v1405_v15 }
 0x859   :  { %v1983_v40 = vpop.eup %1982 }
 0x85a   :  { %v1420_v41 = vmul.f32 %v1983_v40, %v1404_v20  ;;  %v1427_v42 = vmul.f32 %v1425_v37, %v1421_v39 }
 0x85c   :  { %v1426_v44 = vmul.f32 %v1425_v37, %v1420_v41  ;;  %v1433_v46 = vadd.f32 %v1431_v43, %v1427_v42 }
 0x85e   :  { %v1432_v45 = vadd.f32 %v1431_v43, %v1426_v44 }
 0x860   :  { %1937 = vmatprep.mubr.msk.f32.mxu0 %vm80_vm0, %v1432_v45  ;;  %v1667_v45 = vsub.s32 5, %v2279_v60 }
 0x861   :  { %1938 = vmatmul.mubr.msk.f32.vlgmr.msra.gmra.mxu0 %vm80_vm0, %v1433_v46  ;;  %v1673_v46 = vsub.s32 6, %v2279_v60 }
 0x862   :  { %v1668_v47 = vrot.slane %v2285_v62, %v1667_v45 }
 0x863   :  { %v1674_v50 = vrot.slane %v2285_v62, %v1673_v46 }
 0x921   :  { %v1939_v56 = vpop.f32.mrf.mxu0 }
 0x922   :  { %v1520_v57 = vadd.f32 %v1939_v56, %v1441_v55 }
 0x923   :  { %v1514_v58 = vpop.f32.mrf.mxu0 }
 0x924   :  { %v1526_v59 = vmul.f32 0.70710677, %v1520_v57  ;;  %v1515_v61 = vadd.f32 %v1514_v58, %v1441_v55  ;;  %v1524_v5 = vmul.f32 0.5, %v1520_v57 }
 0x926   :  { %1984 = verf.f32 %v1526_v59  ;;  %v1525_v63 = vmul.f32 0.70710677, %v1515_v61  ;;  %v1523_v3 = vmul.f32 0.5, %v1515_v61 }
 0x928   :  { %1986 = verf.f32 %v1525_v63 }
 0x933   :  { %v1985_v0 = vpop.eup %1984 }
 0x934   :  { %v1530_v2 = vadd.f32 1.0, %v1985_v0 }
 0x935   :  { %v1987_v1 = vpop.eup %1986 }
 0x936   :  { %v1529_v4 = vadd.f32 1.0, %v1987_v1  ;;  %v1532_v7 = vmul.f32 %v1530_v2, %v1524_v5 }
 0x938   :  { %v1531_v6 = vmul.f32 %v1529_v4, %v1523_v3 }
 0x93a   :  { %1956 = vmatprep.mubr.msk.f32.mxu1 %vm1545_vm4, %v1531_v6 }
 0x93b   :  { %1957 = vmatmul.mubr.msk.f32.vlgmr.msra.gmra.mxu1 %vm1545_vm4, %v1532_v7 }
 0x9fb   :  { %v1958_v10 = vpop.f32.mrf.mxu1 }
 0x9fc   :  { %v1624_v11 = vadd.f32 %v1958_v10, %v1544_v9 }
 0x9fd   :  { %v1618_v12 = vpop.f32.mrf.mxu1 }
 0x9fe   :  { %v1630_v13 = vmul.f32 0.70710677, %v1624_v11  ;;  %v1619_v14 = vadd.f32 %v1618_v12, %v1544_v9  ;;  %v1628_v20 = vmul.f32 0.5, %v1624_v11 }
 0xa00   :  { %1988 = verf.f32 %v1630_v13  ;;  %v1629_v15 = vmul.f32 0.70710677, %v1619_v14  ;;  %v1627_v23 = vmul.f32 0.5, %v1619_v14 }
 0xa02   :  { %1990 = verf.f32 %v1629_v15 }
 0xa0d   :  { %v1989_v19 = vpop.eup %1988 }
 0xa0e   :  { %v1634_v21 = vadd.f32 1.0, %v1989_v19 }
 0xa0f   :  { %v1991_v22 = vpop.eup %1990 }
 0xa10   :  { %v1636_v24 = vmul.f32 %v1634_v21, %v1628_v20  ;;  %v1633_v25 = vadd.f32 1.0, %v1991_v22 }
 0xa12   :  { %v1638_v26 = vadd.f32 %v1636_v24, %v2144_v17  ;;  %v1635_v27 = vmul.f32 %v1633_v25, %v1627_v23 }
 0xa14   :  { %v1642_v28 = vsel %vm80_vm0, %v1638_v26, 0.0  ;;  %v1637_v29 = vadd.f32 %v1635_v27, %v2137_v16 }
 0xa15   :  { %1643 = vadd.xlane.f32.xlu1 %v1642_v28 }
 0xa16   :  { %v1639_v30 = vsel %vm80_vm0, %v1637_v29, 0.0 }
 0xa17   :  { %1640 = vadd.xlane.f32.xlu0 %v1639_v30 }
 0xa9e   :  { %v1644_v31 = vpop.xlane.xlu1 %1643 }
 0xa9f   :  { %v1646_v32 = vmul.f32 0.03125, %v1644_v31 }
 0xaa0   :  { %v1641_v33 = vpop.xlane.xlu0 %1640 }
 0xaa1   :  { %v1648_v34 = vsub.f32 %v1638_v26, %v1646_v32  ;;  %v1645_v35 = vmul.f32 0.03125, %v1641_v33 }
 0xaa3   :  { %v1647_v36 = vsub.f32 %v1637_v29, %v1645_v35  ;;  %v1650_v37 = vmul.f32 %v1648_v34, %v1648_v34 }
 0xaa5   :  { %v1654_v38 = vsel %vm80_vm0, %v1650_v37, 0.0  ;;  %v1649_v39 = vmul.f32 %v1647_v36, %v1647_v36 }
 0xaa6   :  { %1655 = vadd.xlane.f32.xlu1 %v1654_v38 }
 0xaa7   :  { %v1651_v17 = vsel %vm80_vm0, %v1649_v39, 0.0 }
 0xaa8   :  { %1652 = vadd.xlane.f32.xlu0 %v1651_v17 }
 0xb2f   :  { %v1656_v40 = vpop.xlane.xlu1 %1655 }
 0xb30   :  { %v1658_v16 = vmul.f32 0.03125, %v1656_v40 }
 0xb31   :  { %v1653_v41 = vpop.xlane.xlu0 %1652 }
 0xb32   :  { %v1660_v42 = vadd.f32 1e-05, %v1658_v16  ;;  %v1657_v43 = vmul.f32 0.03125, %v1653_v41 }
 0xb34   :  { %1992 = vrsqrt.f32 %v1660_v42  ;;  %v1659_v44 = vadd.f32 1e-05, %v1657_v43 }
 0xb36   :  { %1994 = vrsqrt.f32 %v1659_v44 }
 0xb41   :  { %v1993_v48 = vpop.eup %1992 }
 0xb42   :  { %v1664_v49 = vmul.f32 %v1993_v48, %v1648_v34 }
 0xb43   :  { %v1995_v51 = vpop.eup %1994 }
 0xb44   :  { %v1663_v52 = vmul.f32 %v1995_v51, %v1647_v36  ;;  %v1670_v53 = vmul.f32 %v1668_v47, %v1664_v49 }
 0xb46   :  { %v1669_v18 = vmul.f32 %v1668_v47, %v1663_v52  ;;  %v1676_v54 = vadd.f32 %v1674_v50, %v1670_v53 }
 0xb48   :  { %v1675_v55 = vadd.f32 %v1674_v50, %v1669_v18  ;;  %1678 = vst.msk [vmem:[#allocation2 + $0x8] sm:$0xff] %vm80_vm0, %v1676_v54 }
 0xb4a   :  { %1677 = vst.msk [vmem:[#allocation2] sm:$0xff] %vm80_vm0, %v1675_v55 }
 0xb4b   :  { %2007 = shalt.err (!%p2004_p4)
}
 0xb4c   :  { %s2021_s15 = smov 128   ;;  %s2022_s16 = smov 8  }
 0xb4d   :  { %1690 = dma.vmem_to_hbm [thread:$0]  %s1685_s0, 256, %s2364_s9, [#allocation3], %s2021_s15, %s2021_s15, %s2022_s16  }
 0xb4e   :  { %2016 = dma.done.wait [#allocation3], 256  }
 0xb4f   :  { %2017 = vsyncadd [#allocation3], 4294967040 }
 0xb50   :  { %1694 = vsyncpa [#allocation3], 1 }

</bundles_post_ra>
